<compile_context>
chip_gen: v6e
topology: v6e:2x2x1
jax: 0.10.0
libtpu: 0.0.40
codegen_flags: <defaults>
</compile_context>

<pallas_src>
import functools

import jax
import jax.numpy as jnp
from jax import lax
from jax.experimental import pallas as pl
from jax.experimental.pallas import tpu as pltpu


def _margin_ranking_loss_kernel(score_ref, summary_ref, out_ref, acc_ref, *,
                                margin, B, N, tile_b):
    # score_ref:   (tile_b, N)   VMEM (native dtype)
    # summary_ref: (tile_b, 1)   VMEM (native dtype)
    # out_ref:     (8, 128)      VMEM f32 (this block's partial loss, broadcast)
    # acc_ref:     (tile_b, N)   VMEM f32 scratch accumulator

    # Load tile once; cast to f32 in-VMEM (inputs may be bf16).
    s = score_ref[...].astype(jnp.float32)        # (tile_b, N)
    summ = summary_ref[...].astype(jnp.float32)   # (tile_b, 1)

    # Row-validity mask for batch padding (padded rows contribute 0).
    b0 = pl.program_id(0) * tile_b
    row = lax.broadcasted_iota(jnp.int32, (tile_b, 1), 0) + b0
    valid = (row < B).astype(jnp.float32)         # (tile_b, 1)

    # ---- summary-vs-candidate term (also initializes the accumulator) ----
    #   mean over (B*N) of relu(score - summary + margin)
    inv_bn = 1.0 / float(B * N)
    acc_ref[...] = (
        jnp.maximum(s - summ + jnp.float32(margin), 0.0) * jnp.float32(inv_bn)
    )

    # ---- pairwise shifted ranking terms ----
    # Fold each shift's 1/(B*(N-i)) weight into the accumulator so the kernel
    # performs a single cross-lane reduction at the end.  Static unroll is fine
    # for MatchSum-sized N (a few tens of candidates).
    # TODO(synk): for very large N, switch to a fori_loop + pltpu.roll formulation.
    for i in range(1, N):
        inv = 1.0 / float(B * (N - i))
        hinge = jnp.maximum(
            s[:, i:] - s[:, : N - i] + jnp.float32(margin * i), 0.0
        )
        acc_ref[:, : N - i] += hinge * jnp.float32(inv)

    # Single reduction, masked for padded rows; lane-dense (8,128) partial store.
    partial = jnp.sum(acc_ref[...] * valid)
    out_ref[...] = jnp.full((8, 128), partial, dtype=jnp.float32)


def _pick_tile_b(B, N):
    # Target ~2 MiB per f32 tile so double-buffered inputs + the f32 scratch
    # accumulator stay well inside the scoped VMEM limit on v5e/v6e and on
    # v7x (which only has 64 MiB physical VMEM).
    budget_bytes = 2 * 1024 * 1024
    tile = budget_bytes // max(1, N * 4)
    tile = max(8, min(1024, tile))
    tile = (tile // 8) * 8
    b_round8 = ((B + 7) // 8) * 8
    return min(tile, b_round8)


def margin_ranking_loss(score, summary_score, margin, *, tile_b=None):
    """Pallas TPU implementation of MarginRankingLoss.forward."""
    B, N = score.shape
    if tile_b is None:
        tile_b = _pick_tile_b(B, N)
    assert tile_b >= 8 and tile_b % 8 == 0

    num_blocks = -(-B // tile_b)          # ceil(B / tile_b)
    B_pad = num_blocks * tile_b

    # Keep the native dtype (e.g. bf16) through the HBM->VMEM DMA; cast in-kernel.
    summary2d = summary_score.reshape(B, 1)
    if B_pad != B:
        score = jnp.pad(score, ((0, B_pad - B), (0, 0)))
        summary2d = jnp.pad(summary2d, ((0, B_pad - B), (0, 0)))

    kernel = functools.partial(
        _margin_ranking_loss_kernel,
        margin=float(margin), B=B, N=N, tile_b=tile_b,
    )

    out = pl.pallas_call(
        kernel,
        out_shape=jax.ShapeDtypeStruct((num_blocks * 8, 128), jnp.float32),
        grid_spec=pltpu.PrefetchScalarGridSpec(
            num_scalar_prefetch=0,
            grid=(num_blocks,),
            in_specs=[
                pl.BlockSpec((tile_b, N), lambda b: (b, 0)),
                pl.BlockSpec((tile_b, 1), lambda b: (b, 0)),
            ],
            out_specs=pl.BlockSpec((8, 128), lambda b: (b, 0)),
            scratch_shapes=[pltpu.VMEM((tile_b, N), jnp.float32)],
        ),
        compiler_params=pltpu.CompilerParams(
            dimension_semantics=("parallel",),
            vmem_limit_bytes=32 * 1024 * 1024,
        ),
    )(score, summary2d)

    # One partial per block lives at element [b*8, 0]; tiny final sum in JAX.
    partials = out.reshape(num_blocks, 8, 128)[:, 0, 0]
    return jnp.sum(partials)


def _reference_loss(score, summary_score, margin):
    """Pure-JAX reference mirroring the PyTorch forward exactly."""
    score = score.astype(jnp.float32)
    summary_score = summary_score.astype(jnp.float32)
    B, N = score.shape
    total = jnp.float32(0.0)  # MarginRankingLoss(0)(score, score, 1) == 0
    for i in range(1, N):
        pos = score[:, : N - i].reshape(-1)
        neg = score[:, i:].reshape(-1)
        total = total + jnp.mean(jnp.maximum(neg - pos + margin * i, 0.0))
    pos = jnp.broadcast_to(summary_score[:, None], score.shape).reshape(-1)
    neg = score.reshape(-1)
    total = total + jnp.mean(jnp.maximum(neg - pos + margin, 0.0))
    return total


if __name__ == "__main__":
    key = jax.random.PRNGKey(0)
    k1, k2, k3, k4 = jax.random.split(key, 4)

    margin = 0.01

    # Case 1: MatchSum-like small shapes (batch=2, num_candidates=8).
    B1, N1 = 2, 8
    score1 = jax.random.normal(k1, (B1, N1), dtype=jnp.float32)
    summ1 = jax.random.normal(k2, (B1,), dtype=jnp.float32)
    loss1 = margin_ranking_loss(score1, summ1, margin)
    jax.block_until_ready(loss1)
    ref1 = _reference_loss(score1, summ1, margin)
    assert jnp.allclose(loss1, ref1, rtol=1e-5, atol=1e-5), (loss1, ref1)

    # Case 2: exercises the batch-tiled grid (3 blocks) + row-padding mask.
    B2, N2 = 20, 16
    score2 = jax.random.normal(k3, (B2, N2), dtype=jnp.float32)
    summ2 = jax.random.normal(k4, (B2,), dtype=jnp.float32)
    loss2 = margin_ranking_loss(score2, summ2, margin, tile_b=8)
    jax.block_until_ready(loss2)
    ref2 = _reference_loss(score2, summ2, margin)
    assert jnp.allclose(loss2, ref2, rtol=1e-5, atol=1e-5), (loss2, ref2)

    print("KERNEL_OK")
</pallas_src>

<mosaic_0001>
module attributes {stable_mosaic.version = 11 : i64} {
  func.func @_margin_ranking_loss_kernel(%arg0: i32, %arg1: memref<8x8xf32, #tpu.memory_space<vmem>>, %arg2: memref<8x1xf32, #tpu.memory_space<vmem>>, %arg3: memref<8x128xf32, #tpu.memory_space<vmem>>, %arg4: memref<8x8xf32, #tpu.memory_space<vmem>>) attributes {dimension_semantics = [#tpu.dimension_semantics<parallel>], iteration_bounds = array<i64: 1>, scalar_prefetch = 0 : i64, scratch_operands = 1 : i64, tpu.core_type = #tpu.core_type<tc>, window_params = [{transform_indices = @transform_0, window_bounds = array<i64: 8, 8>}, {transform_indices = @transform_1, window_bounds = array<i64: 8, 1>}, {transform_indices = @transform_2, window_bounds = array<i64: 8, 128>}]} {
    %c0 = arith.constant 0 : index
    %c0_0 = arith.constant 0 : index
    %0 = vector.load %arg1[%c0, %c0_0] : memref<8x8xf32, #tpu.memory_space<vmem>>, vector<8x8xf32>
    %c0_1 = arith.constant 0 : index
    %c0_2 = arith.constant 0 : index
    %1 = vector.load %arg2[%c0_1, %c0_2] : memref<8x1xf32, #tpu.memory_space<vmem>>, vector<8x1xf32>
    %c8_i32 = arith.constant 8 : i32
    %2 = arith.muli %arg0, %c8_i32 : i32
    %3 = tpu.iota {dimensions = array<i32: 0>} : vector<8x1xi32>
    %4 = vector.broadcast %2 : i32 to vector<8x1xi32>
    %5 = arith.addi %3, %4 : vector<8x1xi32>
    %c2_i32 = arith.constant 2 : i32
    %6 = vector.broadcast %c2_i32 : i32 to vector<8x1xi32>
    %7 = arith.cmpi slt, %5, %6 : vector<8x1xi32>
    %8 = arith.extui %7 : vector<8x1xi1> to vector<8x1xi32>
    %9 = arith.sitofp %8 : vector<8x1xi32> to vector<8x1xf32>
    %10 = vector.broadcast %1 : vector<8x1xf32> to vector<8x8xf32>
    %11 = arith.subf %0, %10 : vector<8x8xf32>
    %cst = arith.constant 0.00999999977 : f32
    %12 = vector.broadcast %cst : f32 to vector<8x8xf32>
    %13 = arith.addf %11, %12 : vector<8x8xf32>
    %cst_3 = arith.constant 0.000000e+00 : f32
    %14 = vector.broadcast %cst_3 : f32 to vector<8x8xf32>
    %15 = arith.maximumf %13, %14 : vector<8x8xf32>
    %cst_4 = arith.constant 6.250000e-02 : f32
    %16 = vector.broadcast %cst_4 : f32 to vector<8x8xf32>
    %17 = arith.mulf %15, %16 : vector<8x8xf32>
    %c0_5 = arith.constant 0 : index
    %c0_6 = arith.constant 0 : index
    %18 = vector.load %arg4[%c0_5, %c0_6] : memref<8x8xf32, #tpu.memory_space<vmem>>, vector<8x8xf32>
    tpu.vector_store %arg4[%c0_5, %c0_6], %17 {strides = array<i32>} : memref<8x8xf32, #tpu.memory_space<vmem>>, vector<8x8xf32>,
    %19 = vector.extract_strided_slice %0 {offsets = [0, 1], sizes = [8, 7], strides = [1, 1]} : vector<8x8xf32> to vector<8x7xf32>
    %20 = vector.extract_strided_slice %0 {offsets = [0, 0], sizes = [8, 7], strides = [1, 1]} : vector<8x8xf32> to vector<8x7xf32>
    %21 = arith.subf %19, %20 : vector<8x7xf32>
    %cst_7 = arith.constant 0.00999999977 : f32
    %22 = vector.broadcast %cst_7 : f32 to vector<8x7xf32>
    %23 = arith.addf %21, %22 : vector<8x7xf32>
    %cst_8 = arith.constant 0.000000e+00 : f32
    %24 = vector.broadcast %cst_8 : f32 to vector<8x7xf32>
    %25 = arith.maximumf %23, %24 : vector<8x7xf32>
    %c0_9 = arith.constant 0 : index
    %c0_10 = arith.constant 0 : index
    %26 = vector.load %arg4[%c0_9, %c0_10] : memref<8x8xf32, #tpu.memory_space<vmem>>, vector<8x7xf32>
    %cst_11 = arith.constant 0.0714285746 : f32
    %27 = vector.broadcast %cst_11 : f32 to vector<8x7xf32>
    %28 = arith.mulf %25, %27 : vector<8x7xf32>
    %29 = arith.addf %26, %28 : vector<8x7xf32>
    %c0_12 = arith.constant 0 : index
    %c0_13 = arith.constant 0 : index
    %30 = vector.load %arg4[%c0_12, %c0_13] : memref<8x8xf32, #tpu.memory_space<vmem>>, vector<8x7xf32>
    tpu.vector_store %arg4[%c0_12, %c0_13], %29 {strides = array<i32>} : memref<8x8xf32, #tpu.memory_space<vmem>>, vector<8x7xf32>,
    %31 = vector.extract_strided_slice %0 {offsets = [0, 2], sizes = [8, 6], strides = [1, 1]} : vector<8x8xf32> to vector<8x6xf32>
    %32 = vector.extract_strided_slice %0 {offsets = [0, 0], sizes = [8, 6], strides = [1, 1]} : vector<8x8xf32> to vector<8x6xf32>
    %33 = arith.subf %31, %32 : vector<8x6xf32>
    %cst_14 = arith.constant 2.000000e-02 : f32
    %34 = vector.broadcast %cst_14 : f32 to vector<8x6xf32>
    %35 = arith.addf %33, %34 : vector<8x6xf32>
    %cst_15 = arith.constant 0.000000e+00 : f32
    %36 = vector.broadcast %cst_15 : f32 to vector<8x6xf32>
    %37 = arith.maximumf %35, %36 : vector<8x6xf32>
    %c0_16 = arith.constant 0 : index
    %c0_17 = arith.constant 0 : index
    %38 = vector.load %arg4[%c0_16, %c0_17] : memref<8x8xf32, #tpu.memory_space<vmem>>, vector<8x6xf32>
    %cst_18 = arith.constant 0.0833333358 : f32
    %39 = vector.broadcast %cst_18 : f32 to vector<8x6xf32>
    %40 = arith.mulf %37, %39 : vector<8x6xf32>
    %41 = arith.addf %38, %40 : vector<8x6xf32>
    %c0_19 = arith.constant 0 : index
    %c0_20 = arith.constant 0 : index
    %42 = vector.load %arg4[%c0_19, %c0_20] : memref<8x8xf32, #tpu.memory_space<vmem>>, vector<8x6xf32>
    tpu.vector_store %arg4[%c0_19, %c0_20], %41 {strides = array<i32>} : memref<8x8xf32, #tpu.memory_space<vmem>>, vector<8x6xf32>,
    %43 = vector.extract_strided_slice %0 {offsets = [0, 3], sizes = [8, 5], strides = [1, 1]} : vector<8x8xf32> to vector<8x5xf32>
    %44 = vector.extract_strided_slice %0 {offsets = [0, 0], sizes = [8, 5], strides = [1, 1]} : vector<8x8xf32> to vector<8x5xf32>
    %45 = arith.subf %43, %44 : vector<8x5xf32>
    %cst_21 = arith.constant 3.000000e-02 : f32
    %46 = vector.broadcast %cst_21 : f32 to vector<8x5xf32>
    %47 = arith.addf %45, %46 : vector<8x5xf32>
    %cst_22 = arith.constant 0.000000e+00 : f32
    %48 = vector.broadcast %cst_22 : f32 to vector<8x5xf32>
    %49 = arith.maximumf %47, %48 : vector<8x5xf32>
    %c0_23 = arith.constant 0 : index
    %c0_24 = arith.constant 0 : index
    %50 = vector.load %arg4[%c0_23, %c0_24] : memref<8x8xf32, #tpu.memory_space<vmem>>, vector<8x5xf32>
    %cst_25 = arith.constant 1.000000e-01 : f32
    %51 = vector.broadcast %cst_25 : f32 to vector<8x5xf32>
    %52 = arith.mulf %49, %51 : vector<8x5xf32>
    %53 = arith.addf %50, %52 : vector<8x5xf32>
    %c0_26 = arith.constant 0 : index
    %c0_27 = arith.constant 0 : index
    %54 = vector.load %arg4[%c0_26, %c0_27] : memref<8x8xf32, #tpu.memory_space<vmem>>, vector<8x5xf32>
    tpu.vector_store %arg4[%c0_26, %c0_27], %53 {strides = array<i32>} : memref<8x8xf32, #tpu.memory_space<vmem>>, vector<8x5xf32>,
    %55 = vector.extract_strided_slice %0 {offsets = [0, 4], sizes = [8, 4], strides = [1, 1]} : vector<8x8xf32> to vector<8x4xf32>
    %56 = vector.extract_strided_slice %0 {offsets = [0, 0], sizes = [8, 4], strides = [1, 1]} : vector<8x8xf32> to vector<8x4xf32>
    %57 = arith.subf %55, %56 : vector<8x4xf32>
    %cst_28 = arith.constant 4.000000e-02 : f32
    %58 = vector.broadcast %cst_28 : f32 to vector<8x4xf32>
    %59 = arith.addf %57, %58 : vector<8x4xf32>
    %cst_29 = arith.constant 0.000000e+00 : f32
    %60 = vector.broadcast %cst_29 : f32 to vector<8x4xf32>
    %61 = arith.maximumf %59, %60 : vector<8x4xf32>
    %c0_30 = arith.constant 0 : index
    %c0_31 = arith.constant 0 : index
    %62 = vector.load %arg4[%c0_30, %c0_31] : memref<8x8xf32, #tpu.memory_space<vmem>>, vector<8x4xf32>
    %cst_32 = arith.constant 1.250000e-01 : f32
    %63 = vector.broadcast %cst_32 : f32 to vector<8x4xf32>
    %64 = arith.mulf %61, %63 : vector<8x4xf32>
    %65 = arith.addf %62, %64 : vector<8x4xf32>
    %c0_33 = arith.constant 0 : index
    %c0_34 = arith.constant 0 : index
    %66 = vector.load %arg4[%c0_33, %c0_34] : memref<8x8xf32, #tpu.memory_space<vmem>>, vector<8x4xf32>
    tpu.vector_store %arg4[%c0_33, %c0_34], %65 {strides = array<i32>} : memref<8x8xf32, #tpu.memory_space<vmem>>, vector<8x4xf32>,
    %67 = vector.extract_strided_slice %0 {offsets = [0, 5], sizes = [8, 3], strides = [1, 1]} : vector<8x8xf32> to vector<8x3xf32>
    %68 = vector.extract_strided_slice %0 {offsets = [0, 0], sizes = [8, 3], strides = [1, 1]} : vector<8x8xf32> to vector<8x3xf32>
    %69 = arith.subf %67, %68 : vector<8x3xf32>
    %cst_35 = arith.constant 5.000000e-02 : f32
    %70 = vector.broadcast %cst_35 : f32 to vector<8x3xf32>
    %71 = arith.addf %69, %70 : vector<8x3xf32>
    %cst_36 = arith.constant 0.000000e+00 : f32
    %72 = vector.broadcast %cst_36 : f32 to vector<8x3xf32>
    %73 = arith.maximumf %71, %72 : vector<8x3xf32>
    %c0_37 = arith.constant 0 : index
    %c0_38 = arith.constant 0 : index
    %74 = vector.load %arg4[%c0_37, %c0_38] : memref<8x8xf32, #tpu.memory_space<vmem>>, vector<8x3xf32>
    %cst_39 = arith.constant 0.166666672 : f32
    %75 = vector.broadcast %cst_39 : f32 to vector<8x3xf32>
    %76 = arith.mulf %73, %75 : vector<8x3xf32>
    %77 = arith.addf %74, %76 : vector<8x3xf32>
    %c0_40 = arith.constant 0 : index
    %c0_41 = arith.constant 0 : index
    %78 = vector.load %arg4[%c0_40, %c0_41] : memref<8x8xf32, #tpu.memory_space<vmem>>, vector<8x3xf32>
    tpu.vector_store %arg4[%c0_40, %c0_41], %77 {strides = array<i32>} : memref<8x8xf32, #tpu.memory_space<vmem>>, vector<8x3xf32>,
    %79 = vector.extract_strided_slice %0 {offsets = [0, 6], sizes = [8, 2], strides = [1, 1]} : vector<8x8xf32> to vector<8x2xf32>
    %80 = vector.extract_strided_slice %0 {offsets = [0, 0], sizes = [8, 2], strides = [1, 1]} : vector<8x8xf32> to vector<8x2xf32>
    %81 = arith.subf %79, %80 : vector<8x2xf32>
    %cst_42 = arith.constant 6.000000e-02 : f32
    %82 = vector.broadcast %cst_42 : f32 to vector<8x2xf32>
    %83 = arith.addf %81, %82 : vector<8x2xf32>
    %cst_43 = arith.constant 0.000000e+00 : f32
    %84 = vector.broadcast %cst_43 : f32 to vector<8x2xf32>
    %85 = arith.maximumf %83, %84 : vector<8x2xf32>
    %c0_44 = arith.constant 0 : index
    %c0_45 = arith.constant 0 : index
    %86 = vector.load %arg4[%c0_44, %c0_45] : memref<8x8xf32, #tpu.memory_space<vmem>>, vector<8x2xf32>
    %cst_46 = arith.constant 2.500000e-01 : f32
    %87 = vector.broadcast %cst_46 : f32 to vector<8x2xf32>
    %88 = arith.mulf %85, %87 : vector<8x2xf32>
    %89 = arith.addf %86, %88 : vector<8x2xf32>
    %c0_47 = arith.constant 0 : index
    %c0_48 = arith.constant 0 : index
    %90 = vector.load %arg4[%c0_47, %c0_48] : memref<8x8xf32, #tpu.memory_space<vmem>>, vector<8x2xf32>
    tpu.vector_store %arg4[%c0_47, %c0_48], %89 {strides = array<i32>} : memref<8x8xf32, #tpu.memory_space<vmem>>, vector<8x2xf32>,
    %91 = vector.extract_strided_slice %0 {offsets = [0, 7], sizes = [8, 1], strides = [1, 1]} : vector<8x8xf32> to vector<8x1xf32>
    %92 = vector.extract_strided_slice %0 {offsets = [0, 0], sizes = [8, 1], strides = [1, 1]} : vector<8x8xf32> to vector<8x1xf32>
    %93 = arith.subf %91, %92 : vector<8x1xf32>
    %cst_49 = arith.constant 7.000000e-02 : f32
    %94 = vector.broadcast %cst_49 : f32 to vector<8x1xf32>
    %95 = arith.addf %93, %94 : vector<8x1xf32>
    %cst_50 = arith.constant 0.000000e+00 : f32
    %96 = vector.broadcast %cst_50 : f32 to vector<8x1xf32>
    %97 = arith.maximumf %95, %96 : vector<8x1xf32>
    %c0_51 = arith.constant 0 : index
    %c0_52 = arith.constant 0 : index
    %98 = vector.load %arg4[%c0_51, %c0_52] : memref<8x8xf32, #tpu.memory_space<vmem>>, vector<8x1xf32>
    %cst_53 = arith.constant 5.000000e-01 : f32
    %99 = vector.broadcast %cst_53 : f32 to vector<8x1xf32>
    %100 = arith.mulf %97, %99 : vector<8x1xf32>
    %101 = arith.addf %98, %100 : vector<8x1xf32>
    %c0_54 = arith.constant 0 : index
    %c0_55 = arith.constant 0 : index
    %102 = vector.load %arg4[%c0_54, %c0_55] : memref<8x8xf32, #tpu.memory_space<vmem>>, vector<8x1xf32>
    tpu.vector_store %arg4[%c0_54, %c0_55], %101 {strides = array<i32>} : memref<8x8xf32, #tpu.memory_space<vmem>>, vector<8x1xf32>,
    %c0_56 = arith.constant 0 : index
    %c0_57 = arith.constant 0 : index
    %103 = vector.load %arg4[%c0_56, %c0_57] : memref<8x8xf32, #tpu.memory_space<vmem>>, vector<8x8xf32>
    %104 = vector.broadcast %9 : vector<8x1xf32> to vector<8x8xf32>
    %105 = arith.mulf %103, %104 : vector<8x8xf32>
    %106 = vector.shape_cast %105 : vector<8x8xf32> to vector<1x8x8xf32>
    %cst_58 = arith.constant dense<0.000000e+00> : vector<1xf32>
    %107 = vector.multi_reduction <add>, %106, %cst_58 [1, 2] : vector<1x8x8xf32> to vector<1xf32>
    %108 = vector.shape_cast %107 : vector<1xf32> to vector<1x1x1xf32>
    %109 = vector.extract %108[0, 0, 0] : f32 from vector<1x1x1xf32>
    %110 = vector.broadcast %109 : f32 to vector<8x128xf32>
    %c0_59 = arith.constant 0 : index
    %c0_60 = arith.constant 0 : index
    %111 = vector.load %arg3[%c0_59, %c0_60] : memref<8x128xf32, #tpu.memory_space<vmem>>, vector<8x128xf32>
    tpu.vector_store %arg3[%c0_59, %c0_60], %110 {strides = array<i32>} : memref<8x128xf32, #tpu.memory_space<vmem>>, vector<8x128xf32>,
    return
  }
  func.func @transform_0(%arg0: i32) -> (i32, i32) {
    %c0_i32 = arith.constant 0 : i32
    %c0_i32_0 = arith.constant 0 : i32
    return %arg0, %c0_i32 : i32, i32
  }
  func.func @transform_1(%arg0: i32) -> (i32, i32) {
    %c0_i32 = arith.constant 0 : i32
    %c0_i32_0 = arith.constant 0 : i32
    return %arg0, %c0_i32 : i32, i32
  }
  func.func @transform_2(%arg0: i32) -> (i32, i32) {
    %c0_i32 = arith.constant 0 : i32
    %c0_i32_0 = arith.constant 0 : i32
    return %arg0, %c0_i32 : i32, i32
  }
}

</mosaic_0001>

<bundles_post_ra>
// kernel: tpu_custom_call.1
= control target key start
LH: loop header
LB: loop body
LE: loop exit
PB: predicated region body
PF: predicated region fallthrough
CT: control target
= control target key end

     0   :  { %s211_s11 = smov 1   ;;  %v212_v1 = vmov 0   ;;  %s271_s0 = inlined_call_operand.vmem [shape: f32[8,8], index: 0, kind: input, shape index: {}]   ;;  %s272_s1 = inlined_call_operand.vmem [shape: f32[8,1], index: 1, kind: input, shape index: {}]   ;;  %s273_s2 = inlined_call_operand.hbm [shape: f32[8,128], index: 2, kind: output, shape index: {}]  }
   0x1   :  { %v246_v0 = vld [vmem:[%s271_s0] sm:$0xff]  ;;  %187 = vset.pattern.permute.xlu1 %v212_v1 }
   0x2   :  { %34 = vrot.lane.b32.xlu0 %v246_v0, %s211_s11 }
   0x3   :  { %7 = vsyncpa [#allocation4], 0  ;;  %s213_s12 = smov 3   ;;  %188 = vset.pattern.permute.xlu0 %v212_v1  ;;  %s214_s13 = smov 2   ;;  %v13_v2 = vld [vmem:[%s272_s1] sm:$0xff]  ;;  %vm31_vm0 = vcmask 64512   ;;  %v15_v61 = vlaneseq }
   0x4   :  { %64 = vrot.lane.b32.xlu1 %v246_v0, %s213_s12  ;;  %s215_s14 = smov 4   ;;  %s216_s0 = smov 5   ;;  %vm47_vm1 = vcmask 56320   ;;  %vm62_vm2 = vcmask 48128   ;;  %vm77_vm3 = vcmask 39936   ;;  %vm92_vm4 = vcmask 31744  }
   0x5   :  { %s217_s17 = smov 6   ;;  %s218_s18 = smov 7   ;;  %vm107_vm5 = vcmask 23552   ;;  %vm122_vm6 = vcmask 15360   ;;  %vm137_vm7 = vcmask 7168   ;;  %v16_v1 = vshrl.u32 %v15_v61, 7 }
   0x6   :  { %49 = vrot.lane.b32.xlu0 %v246_v0, %s214_s13  ;;  %s219_s1 = smov 127   ;;  %s220_s19 = smov 126  }
   0x7   :  { %s221_s20 = smov 125   ;;  %s222_s21 = smov 124   ;;  %vm19_vm8 = vcmp.lt.s32.totalorder %v16_v1, 2 }
   0x8   :  { %79 = vrot.lane.b32.xlu1 %v246_v0, %s215_s14  ;;  %s223_s22 = smov 123   ;;  %s224_s23 = smov 122  }
   0x9   :  { %s225_s24 = smov 121   ;;  %s227_s25 = smov [#allocation3]  }
   0xa   :  { %94 = vrot.lane.b32.xlu0 %v246_v0, %s216_s0  ;;  %s159_s26 = sshll.u32 %s227_s25, 4  ;;  %s160_s26 = int_to_ptr.vmem [resolvable:$true] %s159_s26 }
   0xb   :  { %s189_s28 = scalar_lea.vmem %s160_s26, 128  ;;  %p194_p1 = scmp.lt.s32.totalorder %s160_s26, %s160_s26 }
   0xc   :  { %24 = vperm.xlu1 %187, %v13_v2   ;;  %v226_v2 = vmov 0.0   ;;  %p190_p0 = scmp.ne.s32.totalorder %s160_s26, %s189_s28  ;;  %p195_p2 = scmp.lt.s32.totalorder %s189_s28, %s189_s28 }
   0xe   :  { %109 = vrot.lane.b32.xlu0 %v246_v0, %s217_s17  ;;  %p196_p3 = por %p195_p2, %p194_p1 }
  0x10   :  { %124 = vrot.lane.b32.xlu1 %v246_v0, %s218_s18  ;;  %p197_p4 = pnand %p196_p3, %p190_p0 }
  0x74   :  { %v35_v3 = vpop.permute.xlu0 %34 }
  0x75   :  { %v37_v4 = vsub.f32 %v246_v0, %v35_v3  ;;  %v167_v3 = vsel %vm19_vm8, 1.0, %v226_v2 }
  0x76   :  { %v65_v5 = vpop.permute.xlu1 %64 }
  0x77   :  { %v67_v6 = vsub.f32 %v246_v0, %v65_v5  ;;  %v38_v7 = vadd.f32 0.01, %v37_v4 }
  0x78   :  { %v50_v8 = vpop.permute.xlu0 %49 }
  0x79   :  { %v68_v9 = vadd.f32 0.03, %v67_v6  ;;  %v39_v10 = vmax.f32 %v38_v7, 0.0  ;;  %v52_v11 = vsub.f32 %v246_v0, %v50_v8 }
  0x7a   :  { %v80_v12 = vpop.permute.xlu1 %79 }
  0x7b   :  { %v69_v13 = vmax.f32 %v68_v9, 0.0  ;;  %v82_v14 = vsub.f32 %v246_v0, %v80_v12  ;;  %v41_v15 = vmul.f32 0.071428575, %v39_v10  ;;  %v53_v16 = vadd.f32 0.02, %v52_v11 }
  0x7c   :  { %v95_v18 = vpop.permute.xlu0 %94 }
  0x7d   :  { %v83_v17 = vadd.f32 0.04, %v82_v14  ;;  %43 = vrot.lane.b32.xlu0 %v41_v15, %s219_s1  ;;  %v54_v19 = vmax.f32 %v53_v16, 0.0  ;;  %v71_v20 = vmul.f32 0.1, %v69_v13  ;;  %v97_v21 = vsub.f32 %v246_v0, %v95_v18 }
  0x7f   :  { %v84_v22 = vmax.f32 %v83_v17, 0.0  ;;  %v56_v23 = vmul.f32 0.083333336, %v54_v19  ;;  %v98_v24 = vadd.f32 0.05, %v97_v21 }
  0x80   :  { %v110_v25 = vpop.permute.xlu0 %109 }
  0x81   :  { %58 = vrot.lane.b32.xlu1 %v56_v23, %s220_s19  ;;  %73 = vrot.lane.b32.xlu0 %v71_v20, %s221_s20  ;;  %v86_v26 = vmul.f32 0.125, %v84_v22  ;;  %v99_v27 = vmax.f32 %v98_v24, 0.0  ;;  %v112_v28 = vsub.f32 %v246_v0, %v110_v25 }
  0x83   :  { %v101_v29 = vmul.f32 0.16666667, %v99_v27  ;;  %v113_v30 = vadd.f32 0.06, %v112_v28 }
  0x85   :  { %88 = vrot.lane.b32.xlu1 %v86_v26, %s222_s21  ;;  %103 = vrot.lane.b32.xlu0 %v101_v29, %s223_s22  ;;  %v114_v31 = vmax.f32 %v113_v30, 0.0 }
  0x87   :  { %v25_v32 = vpop.permute.xlu1 %24  ;;  %v116_v33 = vmul.f32 0.25, %v114_v31 }
  0x88   :  { %v27_v34 = vsub.f32 %v246_v0, %v25_v32 }
  0x89   :  { %118 = vrot.lane.b32.xlu1 %v116_v33, %s224_s23 }
  0x8a   :  { %v28_v35 = vadd.f32 0.01, %v27_v34 }
  0x8b   :  { %v125_v36 = vpop.permute.xlu1 %124 }
  0x8c   :  { %v29_v37 = vmax.f32 %v28_v35, 0.0  ;;  %v127_v38 = vsub.f32 %v246_v0, %v125_v36 }
  0x8e   :  { %v30_v39 = vmul.f32 0.0625, %v29_v37  ;;  %v128_v40 = vadd.f32 0.07, %v127_v38 }
  0x90   :  { %v129_v41 = vmax.f32 %v128_v40, 0.0  ;;  %32 = vst.msk [vmem:[#allocation2] sm:$0xff] %vm31_vm0, %v30_v39 }
  0x92   :  { %v131_v42 = vmul.f32 0.5, %v129_v41 }
  0x94   :  { %133 = vrot.lane.b32.xlu0 %v131_v42, %s225_s24 }
  0x97   :  { %v40_v43 = vld [vmem:[#allocation2] sm:$0xff] }
  0xef   :  { %v44_v44 = vpop.permute.xlu0 %43 }
  0xf0   :  { %v46_v45 = vadd.f32 %v44_v44, %v40_v43 }
  0xf2   :  { %48 = vst.msk [vmem:[#allocation2] sm:$0xff] %vm47_vm1, %v46_v45 }
  0xf3   :  { %v59_v46 = vpop.permute.xlu1 %58  ;;  %v74_v49 = vpop.permute.xlu0 %73 }
  0xf7   :  { %v89_v52 = vpop.permute.xlu1 %88  ;;  %v104_v55 = vpop.permute.xlu0 %103 }
  0xf9   :  { %v55_v47 = vld [vmem:[#allocation2] sm:$0xff] }
  0xfa   :  { %v61_v48 = vadd.f32 %v59_v46, %v55_v47 }
  0xfb   :  { %v119_v58 = vpop.permute.xlu1 %118 }
  0xfc   :  { %63 = vst.msk [vmem:[#allocation2] sm:$0xff] %vm62_vm2, %v61_v48 }
 0x103   :  { %v70_v50 = vld [vmem:[#allocation2] sm:$0xff] }
 0x104   :  { %v76_v51 = vadd.f32 %v74_v49, %v70_v50 }
 0x106   :  { %78 = vst.msk [vmem:[#allocation2] sm:$0xff] %vm77_vm3, %v76_v51  ;;  %v134_v62 = vpop.permute.xlu0 %133 }
 0x10d   :  { %v85_v53 = vld [vmem:[#allocation2] sm:$0xff] }
 0x10e   :  { %v91_v54 = vadd.f32 %v89_v52, %v85_v53 }
 0x110   :  { %93 = vst.msk [vmem:[#allocation2] sm:$0xff] %vm92_vm4, %v91_v54 }
 0x117   :  { %v100_v56 = vld [vmem:[#allocation2] sm:$0xff] }
 0x118   :  { %v106_v57 = vadd.f32 %v104_v55, %v100_v56 }
 0x11a   :  { %108 = vst.msk [vmem:[#allocation2] sm:$0xff] %vm107_vm5, %v106_v57 }
 0x121   :  { %v115_v59 = vld [vmem:[#allocation2] sm:$0xff] }
 0x122   :  { %v121_v60 = vadd.f32 %v119_v58, %v115_v59 }
 0x124   :  { %123 = vst.msk [vmem:[#allocation2] sm:$0xff] %vm122_vm6, %v121_v60 }
 0x12b   :  { %v130_v63 = vld [vmem:[#allocation2] sm:$0xff] }
 0x12c   :  { %v136_v0 = vadd.f32 %v134_v62, %v130_v63 }
 0x12e   :  { %138 = vst.msk [vmem:[#allocation2] sm:$0xff] %vm137_vm7, %v136_v0 }
 0x135   :  { %v139_v4 = vld [vmem:[#allocation2] sm:$0xff] }
 0x136   :  { %v140_v5 = vmul.f32 %v167_v3, %v139_v4 }
 0x138   :  { %v141_v6 = vsel %vm31_vm0, %v140_v5, 0.0 }
 0x139   :  { %142 = vadd.xlane.f32.xlu1 %v141_v6 }
 0x1c2   :  { %v143_v7 = vpop.xlane.xlu1 %142 }
 0x1c3   :  { %v144_v8 = vrot.slane %v143_v7, 4 }
 0x1c5   :  { %v145_v9 = vadd.f32 %v144_v8, %v143_v7 }
 0x1c7   :  { %v146_v10 = vrot.slane %v145_v9, 2 }
 0x1c9   :  { %v147_v11 = vadd.f32 %v146_v10, %v145_v9 }
 0x1cb   :  { %v148_v12 = vrot.slane %v147_v11, 1 }
 0x1cd   :  { %v149_v13 = vadd.f32 %v148_v12, %v147_v11 }
 0x1cf   :  { %168 = vpush %v149_v13 }
 0x200   :  { %s169_s27 = spop %168 }
 0x201   :  { %v151_v14 = vstv %s169_s27 }
 0x202   :  { %152 = vst [vmem:[#allocation3] sm:$0xff] %v151_v14 }
 0x203   :  { %200 = shalt.err (!%p197_p4)
}
 0x204   :  { %162 = dma.vmem_to_hbm [thread:$0]  %s160_s26, 128, %s273_s2, [#allocation4]  }
 0x205   :  { %209 = dma.done.wait [#allocation4], 128  }
 0x206   :  { %210 = vsyncadd [#allocation4], 4294967168 }
 0x207   :  { %166 = vsyncpa [#allocation4], 1 }

</bundles_post_ra>
